<compile_context>
chip_gen: v7x
topology: tpu7x:2x2x1
jax: 0.10.0
libtpu: 0.0.40
codegen_flags: <defaults>
</compile_context>

<pallas_src>
import functools

import jax
import jax.numpy as jnp
from jax.experimental import pallas as pl
from jax.experimental.pallas import tpu as pltpu


def _round_up(x, m):
    return (x + m - 1) // m * m


def _item_embedding_kernel(feat_ref, tables_ref, w1_ref, b1_ref, w2_ref, b2_ref,
                           o_ref, *, field_row_offsets):
    """Fused one-hot embedding gather + Linear->ReLU->Linear for one batch tile.

    feat:   [TM, F]       int32 item feature ids (one column per field)
    tables: [TV, allDim]  bf16 block-diagonal embedding tables (TV = sum vocab)
    w1:     [allDim, H]   bf16        b1: [1, H] f32
    w2:     [H, E]        bf16        b2: [1, E] f32
    out:    [TM, E]       f32
    """
    ids = feat_ref[...]                                    # [TM, F] int32
    tm = ids.shape[0]
    tv = tables_ref.shape[0]

    # One-hot selector over the concatenated (block-diagonal) vocab axis.
    # Each field's id lands in its own row-block, so a single matmul yields
    # the per-field embeddings already concatenated along the feature dim.
    col = jax.lax.broadcasted_iota(jnp.int32, (tm, tv), 1)
    onehot = jnp.zeros((tm, tv), jnp.float32)
    for f, off in enumerate(field_row_offsets):            # static, tiny loop
        gid = ids[:, f:f + 1] + off                        # [TM, 1]
        onehot = onehot + (col == gid).astype(jnp.float32)

    # Gather-as-matmul on the MXU: x == concat_f(Embedding_f(ids[:, f])).
    x = jnp.dot(onehot.astype(jnp.bfloat16), tables_ref[...],
                preferred_element_type=jnp.float32)        # [TM, allDim] f32

    # Linear -> ReLU -> Linear  (bf16 operands, f32 accumulation).
    h = jnp.dot(x.astype(jnp.bfloat16), w1_ref[...],
                preferred_element_type=jnp.float32) + b1_ref[...]
    h = jnp.maximum(h, 0.0)
    out = jnp.dot(h.astype(jnp.bfloat16), w2_ref[...],
                  preferred_element_type=jnp.float32) + b2_ref[...]

    o_ref[...] = out.astype(o_ref.dtype)


def item_embedding_forward(item_features, emb_tables, w1, b1, w2, b2,
                           *, block_m=512):
    """item_features: int32 [B, num_fields]; emb_tables: list of [vocab_f, E]."""
    B, num_fields = item_features.shape
    E = emb_tables[0].shape[1]
    all_dim, H = w1.shape
    assert all_dim == num_fields * E

    # Per-field row offsets into the stacked (block-diagonal) table.
    vocabs = [int(t.shape[0]) for t in emb_tables]
    total_vocab = sum(vocabs)
    offsets, row = [], 0
    for v in vocabs:
        offsets.append(row)
        row += v
    offsets = tuple(offsets)

    # Block-diagonal table: row-block f holds table f in column-block f.
    tables_bd = jnp.zeros((total_vocab, all_dim), jnp.float32)
    for f, t in enumerate(emb_tables):
        tables_bd = tables_bd.at[offsets[f]:offsets[f] + vocabs[f],
                                 f * E:(f + 1) * E].set(t.astype(jnp.float32))

    tables_bd = tables_bd.astype(jnp.bfloat16)
    w1_b = w1.astype(jnp.bfloat16)
    w2_b = w2.astype(jnp.bfloat16)
    b1_f = b1.astype(jnp.float32).reshape(1, H)
    b2_f = b2.astype(jnp.float32).reshape(1, E)

    # Batch tiling: multiple of 8 sublanes; pad tail tile with id 0 (valid).
    bm = _round_up(min(block_m, _round_up(max(B, 8), 8)), 8)
    B_pad = _round_up(B, bm)
    feats = item_features.astype(jnp.int32)
    if B_pad != B:
        feats = jnp.pad(feats, ((0, B_pad - B), (0, 0)))

    grid = (B_pad // bm,)

    cost = pl.CostEstimate(
        flops=2 * B_pad * (total_vocab * all_dim + all_dim * H + H * E),
        transcendentals=0,
        bytes_accessed=(B_pad * num_fields * 4            # ids in
                        + B_pad * E * 4                   # out
                        + total_vocab * all_dim * 2       # tables (bf16)
                        + all_dim * H * 2 + H * E * 2     # weights (bf16)
                        + H * 4 + E * 4),                 # biases (f32)
    )

    out = pl.pallas_call(
        functools.partial(_item_embedding_kernel, field_row_offsets=offsets),
        out_shape=jax.ShapeDtypeStruct((B_pad, E), jnp.float32),
        grid_spec=pl.GridSpec(
            grid=grid,
            in_specs=[
                pl.BlockSpec((bm, num_fields), lambda i: (i, 0)),      # ids tile
                pl.BlockSpec((total_vocab, all_dim), lambda i: (0, 0)),  # resident
                pl.BlockSpec((all_dim, H), lambda i: (0, 0)),            # resident
                pl.BlockSpec((1, H), lambda i: (0, 0)),
                pl.BlockSpec((H, E), lambda i: (0, 0)),
                pl.BlockSpec((1, E), lambda i: (0, 0)),
            ],
            out_specs=pl.BlockSpec((bm, E), lambda i: (i, 0)),
        ),
        compiler_params=pltpu.CompilerParams(
            dimension_semantics=("parallel",)),   # v7x: shard batch over 2 TCs
        cost_estimate=cost,
    )(feats, tables_bd, w1_b, b1_f, w2_b, b2_f)

    return out[:B]


if __name__ == "__main__":
    # Small, forward-consistent shapes.
    batch = 20              # not a multiple of the tile -> exercises padding
    num_fields = 4          # number of ITEM-source token features
    embedding_size = 16     # embeddingSize
    hidden_size = 32        # hiddenSize
    vocab_size = 10         # per-field vocabulary
    all_dim = num_fields * embedding_size   # EmbeddingTable.getAllDim()

    key = jax.random.PRNGKey(0)
    k_tabs, k_w1, k_b1, k_w2, k_b2, k_feat = jax.random.split(key, 6)

    tab_keys = jax.random.split(k_tabs, num_fields)
    emb_tables = [
        jax.random.normal(tab_keys[f], (vocab_size, embedding_size), jnp.float32) * 0.1
        for f in range(num_fields)
    ]
    w1 = jax.random.normal(k_w1, (all_dim, hidden_size), jnp.float32) * 0.1
    b1 = jax.random.normal(k_b1, (1, hidden_size), jnp.float32) * 0.1
    w2 = jax.random.normal(k_w2, (hidden_size, embedding_size), jnp.float32) * 0.1
    b2 = jax.random.normal(k_b2, (1, embedding_size), jnp.float32) * 0.1

    item_features = jax.random.randint(
        k_feat, (batch, num_fields), 0, vocab_size, dtype=jnp.int32)

    # block_m=8 at this tiny batch exercises the multi-tile grid + tail pad;
    # real workloads use the default block_m=512.
    out = item_embedding_forward(item_features, emb_tables, w1, b1, w2, b2,
                                 block_m=8)
    out = jax.block_until_ready(out)

    # Pure-JAX f32 reference (bf16 kernel operands => loosened tolerance).
    x_ref = jnp.concatenate(
        [jnp.take(emb_tables[f], item_features[:, f], axis=0)
         for f in range(num_fields)], axis=-1)
    ref = jnp.maximum(x_ref @ w1 + b1, 0.0) @ w2 + b2

    assert out.shape == (batch, embedding_size)
    err = float(jnp.max(jnp.abs(out - ref)))
    assert jnp.allclose(out, ref, atol=2e-2, rtol=2e-2), err

    print("KERNEL_OK")
</pallas_src>

<mosaic_0001>
module attributes {stable_mosaic.version = 11 : i64} {
  func.func @_item_embedding_kernel(%arg0: i32, %arg1: memref<8x4xi32, #tpu.memory_space<vmem>>, %arg2: memref<40x64xbf16, #tpu.memory_space<vmem>>, %arg3: memref<64x32xbf16, #tpu.memory_space<vmem>>, %arg4: memref<1x32xf32, #tpu.memory_space<vmem>>, %arg5: memref<32x16xbf16, #tpu.memory_space<vmem>>, %arg6: memref<1x16xf32, #tpu.memory_space<vmem>>, %arg7: memref<8x16xf32, #tpu.memory_space<vmem>>) attributes {dimension_semantics = [#tpu.dimension_semantics<parallel>], iteration_bounds = array<i64: 3>, scalar_prefetch = 0 : i64, scratch_operands = 0 : i64, tpu.core_type = #tpu.core_type<tc>, window_params = [{transform_indices = @transform_0, window_bounds = array<i64: 8, 4>}, {pipeline_mode = #tpu.pipeline_mode<synchronous>, transform_indices = @transform_1, window_bounds = array<i64: 40, 64>}, {pipeline_mode = #tpu.pipeline_mode<synchronous>, transform_indices = @transform_2, window_bounds = array<i64: 64, 32>}, {pipeline_mode = #tpu.pipeline_mode<synchronous>, transform_indices = @transform_3, window_bounds = array<i64: 1, 32>}, {pipeline_mode = #tpu.pipeline_mode<synchronous>, transform_indices = @transform_4, window_bounds = array<i64: 32, 16>}, {pipeline_mode = #tpu.pipeline_mode<synchronous>, transform_indices = @transform_5, window_bounds = array<i64: 1, 16>}, {transform_indices = @transform_6, window_bounds = array<i64: 8, 16>}]} {
    %c0 = arith.constant 0 : index
    %c0_0 = arith.constant 0 : index
    %0 = vector.load %arg1[%c0, %c0_0] : memref<8x4xi32, #tpu.memory_space<vmem>>, vector<8x4xi32>
    %1 = tpu.iota {dimensions = array<i32: 1>} : vector<8x40xi32>
    %cst = arith.constant 0.000000e+00 : f32
    %2 = vector.broadcast %cst : f32 to vector<8x40xf32>
    %3 = vector.extract_strided_slice %0 {offsets = [0, 0], sizes = [8, 1], strides = [1, 1]} : vector<8x4xi32> to vector<8x1xi32>
    %c0_i32 = arith.constant 0 : i32
    %4 = vector.broadcast %c0_i32 : i32 to vector<8x1xi32>
    %5 = arith.addi %3, %4 : vector<8x1xi32>
    %6 = vector.broadcast %5 : vector<8x1xi32> to vector<8x40xi32>
    %7 = arith.cmpi eq, %1, %6 : vector<8x40xi32>
    %8 = arith.extui %7 : vector<8x40xi1> to vector<8x40xi32>
    %9 = arith.sitofp %8 : vector<8x40xi32> to vector<8x40xf32>
    %10 = arith.addf %2, %9 : vector<8x40xf32>
    %11 = vector.extract_strided_slice %0 {offsets = [0, 1], sizes = [8, 1], strides = [1, 1]} : vector<8x4xi32> to vector<8x1xi32>
    %c10_i32 = arith.constant 10 : i32
    %12 = vector.broadcast %c10_i32 : i32 to vector<8x1xi32>
    %13 = arith.addi %11, %12 : vector<8x1xi32>
    %14 = vector.broadcast %13 : vector<8x1xi32> to vector<8x40xi32>
    %15 = arith.cmpi eq, %1, %14 : vector<8x40xi32>
    %16 = arith.extui %15 : vector<8x40xi1> to vector<8x40xi32>
    %17 = arith.sitofp %16 : vector<8x40xi32> to vector<8x40xf32>
    %18 = arith.addf %10, %17 : vector<8x40xf32>
    %19 = vector.extract_strided_slice %0 {offsets = [0, 2], sizes = [8, 1], strides = [1, 1]} : vector<8x4xi32> to vector<8x1xi32>
    %c20_i32 = arith.constant 20 : i32
    %20 = vector.broadcast %c20_i32 : i32 to vector<8x1xi32>
    %21 = arith.addi %19, %20 : vector<8x1xi32>
    %22 = vector.broadcast %21 : vector<8x1xi32> to vector<8x40xi32>
    %23 = arith.cmpi eq, %1, %22 : vector<8x40xi32>
    %24 = arith.extui %23 : vector<8x40xi1> to vector<8x40xi32>
    %25 = arith.sitofp %24 : vector<8x40xi32> to vector<8x40xf32>
    %26 = arith.addf %18, %25 : vector<8x40xf32>
    %27 = vector.extract_strided_slice %0 {offsets = [0, 3], sizes = [8, 1], strides = [1, 1]} : vector<8x4xi32> to vector<8x1xi32>
    %c30_i32 = arith.constant 30 : i32
    %28 = vector.broadcast %c30_i32 : i32 to vector<8x1xi32>
    %29 = arith.addi %27, %28 : vector<8x1xi32>
    %30 = vector.broadcast %29 : vector<8x1xi32> to vector<8x40xi32>
    %31 = arith.cmpi eq, %1, %30 : vector<8x40xi32>
    %32 = arith.extui %31 : vector<8x40xi1> to vector<8x40xi32>
    %33 = arith.sitofp %32 : vector<8x40xi32> to vector<8x40xf32>
    %34 = arith.addf %26, %33 : vector<8x40xf32>
    %35 = arith.truncf %34 : vector<8x40xf32> to vector<8x40xbf16>
    %c0_1 = arith.constant 0 : index
    %c0_2 = arith.constant 0 : index
    %36 = vector.load %arg2[%c0_1, %c0_2] : memref<40x64xbf16, #tpu.memory_space<vmem>>, vector<40x64xbf16>
    %cst_3 = arith.constant dense<0.000000e+00> : vector<8x64xf32>
    %37 = tpu.matmul %35, %36, %cst_3 {dimension_numbers = #tpu.dot_dimension_numbers<[1], [0], [0], [1], [0, 0, 1, 1], [], []>} : vector<8x40xbf16>, vector<40x64xbf16>, vector<8x64xf32> -> vector<8x64xf32>
    %38 = arith.truncf %37 : vector<8x64xf32> to vector<8x64xbf16>
    %c0_4 = arith.constant 0 : index
    %c0_5 = arith.constant 0 : index
    %39 = vector.load %arg3[%c0_4, %c0_5] : memref<64x32xbf16, #tpu.memory_space<vmem>>, vector<64x32xbf16>
    %cst_6 = arith.constant dense<0.000000e+00> : vector<8x32xf32>
    %40 = tpu.matmul %38, %39, %cst_6 {dimension_numbers = #tpu.dot_dimension_numbers<[1], [0], [0], [1], [0, 0, 1, 1], [], []>} : vector<8x64xbf16>, vector<64x32xbf16>, vector<8x32xf32> -> vector<8x32xf32>
    %c0_7 = arith.constant 0 : index
    %c0_8 = arith.constant 0 : index
    %41 = vector.load %arg4[%c0_7, %c0_8] : memref<1x32xf32, #tpu.memory_space<vmem>>, vector<1x32xf32>
    %42 = vector.broadcast %41 : vector<1x32xf32> to vector<8x32xf32>
    %43 = arith.addf %40, %42 : vector<8x32xf32>
    %cst_9 = arith.constant 0.000000e+00 : f32
    %44 = vector.broadcast %cst_9 : f32 to vector<8x32xf32>
    %45 = arith.maximumf %43, %44 : vector<8x32xf32>
    %46 = arith.truncf %45 : vector<8x32xf32> to vector<8x32xbf16>
    %c0_10 = arith.constant 0 : index
    %c0_11 = arith.constant 0 : index
    %47 = vector.load %arg5[%c0_10, %c0_11] : memref<32x16xbf16, #tpu.memory_space<vmem>>, vector<32x16xbf16>
    %cst_12 = arith.constant dense<0.000000e+00> : vector<8x16xf32>
    %48 = tpu.matmul %46, %47, %cst_12 {dimension_numbers = #tpu.dot_dimension_numbers<[1], [0], [0], [1], [0, 0, 1, 1], [], []>} : vector<8x32xbf16>, vector<32x16xbf16>, vector<8x16xf32> -> vector<8x16xf32>
    %c0_13 = arith.constant 0 : index
    %c0_14 = arith.constant 0 : index
    %49 = vector.load %arg6[%c0_13, %c0_14] : memref<1x16xf32, #tpu.memory_space<vmem>>, vector<1x16xf32>
    %50 = vector.broadcast %49 : vector<1x16xf32> to vector<8x16xf32>
    %51 = arith.addf %48, %50 : vector<8x16xf32>
    %c0_15 = arith.constant 0 : index
    %c0_16 = arith.constant 0 : index
    %52 = vector.load %arg7[%c0_15, %c0_16] : memref<8x16xf32, #tpu.memory_space<vmem>>, vector<8x16xf32>
    tpu.vector_store %arg7[%c0_15, %c0_16], %51 {strides = array<i32>} : memref<8x16xf32, #tpu.memory_space<vmem>>, vector<8x16xf32>,
    return
  }
  func.func @transform_0(%arg0: i32) -> (i32, i32) {
    %c0_i32 = arith.constant 0 : i32
    %c0_i32_0 = arith.constant 0 : i32
    return %arg0, %c0_i32 : i32, i32
  }
  func.func @transform_1(%arg0: i32) -> (i32, i32) {
    %c0_i32 = arith.constant 0 : i32
    %c0_i32_0 = arith.constant 0 : i32
    %c0_i32_1 = arith.constant 0 : i32
    return %c0_i32, %c0_i32_0 : i32, i32
  }
  func.func @transform_2(%arg0: i32) -> (i32, i32) {
    %c0_i32 = arith.constant 0 : i32
    %c0_i32_0 = arith.constant 0 : i32
    %c0_i32_1 = arith.constant 0 : i32
    return %c0_i32, %c0_i32_0 : i32, i32
  }
  func.func @transform_3(%arg0: i32) -> (i32, i32) {
    %c0_i32 = arith.constant 0 : i32
    %c0_i32_0 = arith.constant 0 : i32
    %c0_i32_1 = arith.constant 0 : i32
    return %c0_i32, %c0_i32_0 : i32, i32
  }
  func.func @transform_4(%arg0: i32) -> (i32, i32) {
    %c0_i32 = arith.constant 0 : i32
    %c0_i32_0 = arith.constant 0 : i32
    %c0_i32_1 = arith.constant 0 : i32
    return %c0_i32, %c0_i32_0 : i32, i32
  }
  func.func @transform_5(%arg0: i32) -> (i32, i32) {
    %c0_i32 = arith.constant 0 : i32
    %c0_i32_0 = arith.constant 0 : i32
    %c0_i32_1 = arith.constant 0 : i32
    return %c0_i32, %c0_i32_0 : i32, i32
  }
  func.func @transform_6(%arg0: i32) -> (i32, i32) {
    %c0_i32 = arith.constant 0 : i32
    %c0_i32_0 = arith.constant 0 : i32
    return %arg0, %c0_i32 : i32, i32
  }
}

</mosaic_0001>

<bundles_post_ra>
// kernel: tpu_custom_call.1
= control target key start
LH: loop header
LB: loop body
LE: loop exit
PB: predicated region body
PF: predicated region fallthrough
CT: control target
= control target key end

     0   :  { %s705_s21 = smov 0   ;;  %s781_s0 = inlined_call_operand.vmem [shape: s32[24,4], index: 0, kind: input, shape index: {}]   ;;  %s782_s1 = inlined_call_operand.vmem [shape: bf16[40,64], index: 1, kind: input, shape index: {}]   ;;  %s783_s2 = inlined_call_operand.vmem [shape: bf16[64,32], index: 2, kind: input, shape index: {}]   ;;  %s784_s3 = inlined_call_operand.vmem [shape: f32[1,32], index: 3, kind: input, shape index: {}]   ;;  %s785_s4 = inlined_call_operand.vmem [shape: bf16[32,16], index: 4, kind: input, shape index: {}]   ;;  %s786_s5 = inlined_call_operand.vmem [shape: f32[1,16], index: 5, kind: input, shape index: {}]   ;;  %s787_s6 = inlined_call_operand.vmem [shape: f32[24,16], index: 6, kind: output, shape index: {}]  }
   0x1 LB: > { %s559_s22 = sadd.s32 4294967295, %s662_s21   ;;  %p563_p0 = scmp.ge.s32.totalorder %s662_s21, 1  ;;  %s662_s21 = sphi %s705_s21, %s16_s21  }
   0x2   : > { %p211_p1 = scmp.lt.s32.totalorder %s662_s21, 4 }
   0x4   : > { %p212_p2 = pnand %p563_p0, %p211_p1 }
   0x5   : > { %p239_p3 = scmp.lt.s32.totalorder (!%p212_p2), %s559_s22, 2  ;;  %v664_v0 = vmov (!%p212_p2), 0   ;;  %v665_v1 = vmov (!%p212_p2), 2   ;;  %v666_v2 = vmov (!%p212_p2), 0.0   ;;  %v647_v6 = vld [vmem:[%s782_s1] sm:$0xff] (!%p212_p2)   ;;  %v667_v8 = vmov (!%p212_p2), 1  }
   0x6   : > { %215 = sbr.rel (%p212_p2) target bundleno = 807 (0x327), region = 44  ;;  %642 = vset.pattern.permute.xlu0 (!%p212_p2), %v664_v0  ;;  %644 = vset.pattern.permute.xlu1 (!%p212_p2), %v665_v1  ;;  %v668_v9 = vmov (!%p212_p2), 3   ;;  %v648_v10 = vld [vmem:[%s782_s1 + $0x8] sm:$0xff] (!%p212_p2)   ;;  %v649_v11 = vld [vmem:[%s782_s1 + $0x10] ss:$0 sps:$4 sm:$0xff] (!%p212_p2)   ;;  %vm307_vm0 = vcmask (!%p212_p2), 1043456   ;;  %v249_v16 = vlaneseq (!%p212_p2) }
   0x7   : > { %598 = vmatprep.subr.bf16.mxu0 (!%p212_p2), %v666_v2  ;;  %608 = vmatprep.subr.bf16.mxu1 (!%p212_p2), %v666_v2  ;;  %v309_v12 = vsel (!%p212_p2), %vm307_vm0, %v649_v11, 0  ;;  %vm669_vm1 = vmmov (!%p212_p2), 0   ;;  %v650_v13 = vld [vmem:[%s783_s2] sm:$0xff] (!%p212_p2)   ;;  %v651_v14 = vld [vmem:[%s783_s2 + $0x8] sm:$0xff] (!%p212_p2)   ;;  %v652_v15 = vld [vmem:[%s783_s2 + $0x10] sm:$0xff] (!%p212_p2)   ;;  %vm303_vm6 = vcmask (!%p212_p2), 326656  }
   0x8   : > { %599 = vmatpush3.bf16.msra.mxu0 (!%p212_p2), %v647_v6  ;;  %604 = vmatprep.mubr.msk.bf16.mxu0 (!%p212_p2), %vm669_vm1, %v666_v2  ;;  %v250_v17 = vand.u32 (!%p212_p2), 127, %v249_v16  ;;  %v653_v30 = vld [vmem:[%s783_s2 + $0x18] sm:$0xff] (!%p212_p2)   ;;  %v654_v31 = vld [vmem:[%s785_s4] sm:$0xff] (!%p212_p2)   ;;  %vm391_vm7 = vcmask (!%p212_p2), 523264   ;;  %v655_v37 = vld [vmem:[%s785_s4 + $0x8] sm:$0xff] (!%p212_p2)   ;;  %vm460_vm8 = vcmask (!%p212_p2), 261120  }
   0x9   : > { %600 = vmatprep.subr.bf16.mxu0 (!%p212_p2), %v666_v2  ;;  %616 = vmatprep.mubr.msk.bf16.mxu1 (!%p212_p2), %vm669_vm1, %v666_v2  ;;  %v574_v38 = vld [vmem:[%s784_s3] ss:$0 sm:$0xff] (!%p212_p2)  ;;  %vm504_vm9 = vcmask (!%p212_p2), 130048  }
   0xa   : > { %609 = vmatpush3.bf16.msra.mxu1 (!%p212_p2), %v650_v13  ;;  %v580_v46 = vld [vmem:[%s786_s5] ss:$0 sm:$0xff] (!%p212_p2) }
   0xb   : > { %610 = vmatprep.subr.bf16.mxu1 (!%p212_p2), %v666_v2 }
   0xc   : > { %601 = vmatpush3.bf16.msra.mxu0 (!%p212_p2), %v648_v10 }
   0xd   : > { %s789_s22 = smov (!%p239_p3, %s559_s22), 2  ;;  %602 = vmatprep.subr.bf16.mxu0 %v666_v2 }
   0xe   : > { %s564_s23 = sshll.u32 %s789_s22, 3  ;;  %611 = vmatpush3.bf16.msra.mxu1 %v651_v14 }
   0xf   : > { %s242_s26 = scalar_lea.vmem %s781_s0, %s564_s23  ;;  %612 = vmatprep.subr.bf16.mxu1 %v666_v2  ;;  %s246_s30 = scalar_lea.vmem %s787_s6, %s564_s23 }
  0x10   : > { %v248_v3 = vld [vmem:[%s242_s26] sm:$0xff]  ;;  %603 = vmatpush3.bf16.msra.mxu0 %v309_v12 }
  0x11   : > { %252 = vperm.xlu0 %642, %v248_v3   ;;  %v266_v4 = vadd.s32 20, %v248_v3  ;;  %v258_v5 = vadd.s32 10, %v248_v3  ;;  %v274_v7 = vadd.s32 30, %v248_v3  ;;  %620 = vmatprep.subr.bf16.mxu0 %v666_v2 }
  0x12   : > { %613 = vmatpush3.bf16.msra.mxu1 %v652_v15 }
  0x13   : > { %268 = vperm.xlu1 %644, %v266_v4   ;;  %614 = vmatprep.subr.bf16.mxu1 %v666_v2 }
  0x15   : > { %643 = vset.pattern.permute.xlu0 %v667_v8 }
  0x16   : > { %260 = vperm.xlu0 %643, %v258_v5   ;;  %615 = vmatpush3.bf16.msra.mxu1 %v653_v30 }
  0x17   : > { %645 = vset.pattern.permute.xlu1 %v668_v9 }
  0x18   : > { %276 = vperm.xlu1 %645, %v274_v7  }
  0x1a   : > { %646 = vset.pattern.permute.xlu0 %v668_v9 }
  0x90   : > { %v253_v18 = vpop.permute.xlu0 %252 }
  0x91   : > { %vm254_vm2 = vcmp.eq.s32.totalorder %v250_v17, %v253_v18 }
  0x92   : > { %v269_v19 = vpop.permute.xlu1 %268  ;;  %v566_v21 = vsel %vm254_vm2, 1.0, %v666_v2 }
  0x93   : > { %vm270_vm3 = vcmp.eq.s32.totalorder %v250_v17, %v269_v19 }
  0x94   : > { %v568_v25 = vsel %vm270_vm3, 1.0, %v666_v2 }
  0x95   : > { %v261_v20 = vpop.permute.xlu0 %260 }
  0x96   : > { %vm262_vm4 = vcmp.eq.s32.totalorder %v250_v17, %v261_v20 }
  0x97   : > { %v567_v22 = vsel %vm262_vm4, 1.0, %v666_v2  ;;  %v277_v23 = vpop.permute.xlu1 %276 }
  0x98   : > { %v265_v24 = vadd.f32 %v567_v22, %v566_v21  ;;  %vm278_vm5 = vcmp.eq.s32.totalorder %v250_v17, %v277_v23 }
  0x99   : > { %v569_v26 = vsel %vm278_vm5, 1.0, %v666_v2 }
  0x9a   : > { %v273_v27 = vadd.f32 %v568_v25, %v265_v24 }
  0x9c   : > { %v281_v28 = vadd.f32 %v569_v26, %v273_v27 }
  0x9e   : > { %v282_v29 = vpack.c.bf16 %v281_v28, %v281_v28 }
  0xa0   : > { %605 = vmatmul.mubr.msk.bf16.vlgmr.msra.gmra.mrb[0].mxu0 %vm303_vm6, %v282_v29 }
  0xa1   : > { %624 = vmatprep.mubr.msk.bf16.mxu0 %vm669_vm1, %v666_v2  ;;  %621 = vmatpush3.bf16.msra.mxu0 %v654_v31 }
  0xa2   : > { %622 = vmatprep.subr.bf16.mxu0 %v666_v2 }
  0xa5   : > { %623 = vmatpush3.bf16.msra.mxu0 %v655_v37 }
 0x173   : > { %v345_v32 = vpop.f32.mrb[0].mxu0 }
 0x174   : > { %v351_v33 = vpack.c.bf16 %v345_v32, %v345_v32  ;;  %v606_v34 = vpop.f32.mrb[1].mxu0 }
 0x175   : > { %v348_v35 = vpop.f32.mrb[2].mxu0 }
 0x176   : > { %v607_v36 = vpop.f32.mrb[3].mxu0  ;;  %617 = vmatmul.mubr.msk.bf16.vlgmr.msra.gmra.mrb[0].mxu1 %vm391_vm7, %v351_v33 }
 0x249   : > { %v429_v39 = vpop.f32.mrb[0].mxu1 }
 0x24a   : > { %v430_v40 = vadd.f32 %v574_v38, %v429_v39  ;;  %v618_v41 = vpop.f32.mrb[1].mxu1 }
 0x24b   : > { %v432_v42 = vpop.f32.mrb[2].mxu1 }
 0x24c   : > { %v435_v43 = vmax.f32 %v430_v40, 0.0  ;;  %v619_v44 = vpop.f32.mrb[3].mxu1 }
 0x24e   : > { %v436_v45 = vpack.c.bf16 %v435_v43, %v435_v43 }
 0x250   : > { %625 = vmatmul.mubr.msk.bf16.vlgmr.msra.gmra.mrb[4].mxu0 %vm460_vm8, %v436_v45 }
 0x323   : > { %v498_v47 = vpop.f32.mrb[4].mxu0 }
 0x324   : > { %v499_v48 = vadd.f32 %v580_v46, %v498_v47  ;;  %v626_v49 = vpop.f32.mrb[5].mxu0 }
 0x325   : > { %v501_v50 = vpop.f32.mrb[6].mxu0 }
 0x326   : > { %505 = vst.msk [vmem:[%s246_s30] sm:$0xff] %vm504_vm9, %v499_v48  ;;  %v627_v51 = vpop.f32.mrb[7].mxu0 }
 0x327 PF: > { %s16_s21 = sadd.s32 1, %s662_s21  }
 0x328   : > { %p13_p4 = scmp.ge.s32.totalorder %s16_s21, 5  }
 0x32a   :  { %15 = sbr.rel (!%p13_p4) target bundleno = 1 (0x1), region = 74 }

</bundles_post_ra>
